<compile_context>
chip_gen: v6e
topology: v6e:2x2x1
jax: 0.10.0
libtpu: 0.0.40
codegen_flags: <defaults>
</compile_context>

<pallas_src>
import jax
import jax.numpy as jnp
from jax.experimental import pallas as pl
from jax.experimental.pallas import tpu as pltpu

# Model hyper-parameters (small, consistent with the module).
DIM = 32       # token embedding dim
HIDDEN = 16    # AFT hidden dim per head
HEADS = 2      # number of heads
B = 2          # batch
T = 8          # sequence length
HD = HEADS * HIDDEN          # 32
LANE = 128                   # TPU lane width; fused QKV weight padded to this


def _vmem():
    return pl.BlockSpec(memory_space=pltpu.MemorySpace.VMEM)


# ----------------------------------------------------------------- kernel ----
def aft_fused_kernel(x_ref, wqkv_ref, bqkv_ref, wbias_ref, wout_ref, bout_ref,
                     o_ref):
    # x:     (B*T, DIM)
    # wqkv:  (DIM, LANE)   -- [Wq | Wk | Wv | 0-pad] fused projection weight
    # bqkv:  (1,   LANE)
    # wbias: (T,   HD)     -- position bias in the 2D row layout (single copy)
    # wout:  (HD,  DIM)    -- un-padded output projection
    # bout:  (1,   DIM)
    # o:     (B*T, DIM)
    x = x_ref[...]

    # Single lane-dense fused QKV projection (one 128-wide MXU matmul).
    qkv = jnp.dot(x, wqkv_ref[...], preferred_element_type=jnp.float32) + bqkv_ref[...]
    q = qkv[:, 0 * HD:1 * HD]
    k = qkv[:, 1 * HD:2 * HD]
    v = qkv[:, 2 * HD:3 * HD]

    wb = wbias_ref[...]                                  # (T, HD), single copy

    # AFT core.  The reference reduces over dim 0 (= batch); in the 2D
    # (B*T, HD) layout that is a sum over the B aligned T-row groups.
    # A per-group max is subtracted before exp (overflow insurance; it cancels
    # exactly in the wsum/denom ratio).
    m = k[0:T, :] + wb
    for b in range(1, B):
        m = jnp.maximum(m, k[b * T:(b + 1) * T, :] + wb)

    e = jnp.exp(k[0:T, :] + wb - m)
    denom = e
    wsum = e * v[0:T, :]
    for b in range(1, B):
        e = jnp.exp(k[b * T:(b + 1) * T, :] + wb - m)
        denom = denom + e
        wsum = wsum + e * v[b * T:(b + 1) * T, :]

    # EUP approx reciprocal + one Newton-Raphson step (two VALU FMAs, ~free).
    r = pl.reciprocal(denom, approx=True)
    r = r * (2.0 - denom * r)
    weighted = wsum * r                                  # (T, HD)

    # Single-tanh sigmoid: one EUP op per element instead of exp + reciprocal.
    q_sig = 0.5 * jnp.tanh(0.5 * q) + 0.5                # (B*T, HD)

    # Broadcast `weighted` over batch with per-batch slice multiplies (no
    # B-times duplicated temp of `weighted`).
    y = jnp.concatenate(
        [q_sig[b * T:(b + 1) * T, :] * weighted for b in range(B)], axis=0)

    # Fused output projection straight into the un-padded output block.
    o_ref[...] = (jnp.dot(y, wout_ref[...], preferred_element_type=jnp.float32)
                  + bout_ref[...])


# ---------------------------------------------------------------- wrappers ---
def prepare_params(params):
    """One-time weight fusion / padding / bias re-layout.

    Runs ONCE at init/load time (hoisted out of the jitted forward), so the
    forward pass contains no per-call concat/pad/tile XLA ops.
    """
    wqkv = jnp.concatenate([params["wq"], params["wk"], params["wv"]], axis=1)  # (DIM, 3*HD)
    bqkv = jnp.concatenate([params["bq"], params["bk"], params["bv"]], axis=1)  # (1, 3*HD)
    wqkv = jnp.pad(wqkv, ((0, 0), (0, LANE - 3 * HD)))                          # (DIM, LANE)
    bqkv = jnp.pad(bqkv, ((0, 0), (0, LANE - 3 * HD)))                          # (1, LANE)

    # Position bias (heads, T, 1) -> the per-row pattern of the reference's raw
    # row-major (B, T, HD) <-> (B, heads, T, hidden) view; single (T, HD) copy.
    wbias2d = jnp.broadcast_to(params["wbias"], (HEADS, T, HIDDEN)).reshape(T, HD)

    return {
        "wqkv": wqkv,
        "bqkv": bqkv,
        "wbias2d": wbias2d,
        "wout": params["wout"],   # (HD, DIM), un-padded
        "bout": params["bout"],   # (1, DIM), un-padded
    }


def aft_full_attention(x, fused):
    Bsz, Tlen, dim = x.shape
    xf = x.reshape(Bsz * Tlen, dim)
    out = pl.pallas_call(
        aft_fused_kernel,
        out_shape=jax.ShapeDtypeStruct((Bsz * Tlen, dim), jnp.float32),
        in_specs=[_vmem()] * 6,
        out_specs=_vmem(),
    )(xf, fused["wqkv"], fused["bqkv"], fused["wbias2d"], fused["wout"],
      fused["bout"])
    return out.reshape(Bsz, Tlen, dim)


# ---------------------------------------------------------------- reference --
def aft_full_attention_ref(x, params):
    Bsz, Tlen, dim = x.shape
    H, D = HEADS, HIDDEN
    Q = (x @ params["wq"] + params["bq"]).reshape(Bsz, H, Tlen, D)
    K = (x @ params["wk"] + params["bk"]).reshape(Bsz, H, Tlen, D)
    V = (x @ params["wv"] + params["bv"]).reshape(Bsz, H, Tlen, D)
    numer = jnp.exp(K + params["wbias"][None])
    denom = numer.sum(0)                       # sum over dim 0 (batch), as in the module
    weighted = (numer * V).sum(0) / denom
    Yt = jax.nn.sigmoid(Q) * weighted[None]
    Yt = Yt.reshape(Bsz, Tlen, H * D)
    return Yt @ params["wout"] + params["bout"]


# ---------------------------------------------------------------- params -----
def init_params(key):
    ks = jax.random.split(key, 9)
    lim_in = 1.0 / jnp.sqrt(DIM)
    lim_out = 1.0 / jnp.sqrt(HD)
    u = lambda k, shape, lim: jax.random.uniform(k, shape, jnp.float32, -lim, lim)
    return {
        # weights stored pre-transposed as (in, out): y = x @ W + b
        "wq": u(ks[0], (DIM, HD), lim_in),
        "bq": u(ks[1], (1, HD), lim_in),
        "wk": u(ks[2], (DIM, HD), lim_in),
        "bk": u(ks[3], (1, HD), lim_in),
        "wv": u(ks[4], (DIM, HD), lim_in),
        "bv": u(ks[5], (1, HD), lim_in),
        "wout": u(ks[6], (HD, DIM), lim_out),
        "bout": u(ks[7], (1, DIM), lim_out),
        # reference draws wbias ~ U[0,1) inside forward; made deterministic here
        "wbias": jax.random.uniform(ks[8], (HEADS, T, 1), jnp.float32),
    }


if __name__ == "__main__":
    key = jax.random.PRNGKey(0)
    kx, kp = jax.random.split(key)
    x = jax.random.normal(kx, (B, T, DIM), jnp.float32)
    params = init_params(kp)

    # One-time preparation (outside the jitted forward).
    fused = jax.tree_util.tree_map(jax.block_until_ready, prepare_params(params))

    fwd = jax.jit(aft_full_attention)
    out = jax.block_until_ready(fwd(x, fused))

    ref = aft_full_attention_ref(x, params)
    assert out.shape == (B, T, DIM)
    # Newton-refined reciprocal + exact-form sigmoid -> 10x tighter tolerance.
    assert jnp.allclose(out, ref, atol=1e-3, rtol=1e-3), "mismatch vs reference"
    print("KERNEL_OK")
</pallas_src>

<mosaic_0001>
module attributes {stable_mosaic.version = 11 : i64} {
  func.func @aft_fused_kernel(%arg0: memref<16x32xf32, #tpu.memory_space<vmem>>, %arg1: memref<32x128xf32, #tpu.memory_space<vmem>>, %arg2: memref<1x128xf32, #tpu.memory_space<vmem>>, %arg3: memref<8x32xf32, #tpu.memory_space<vmem>>, %arg4: memref<32x32xf32, #tpu.memory_space<vmem>>, %arg5: memref<1x32xf32, #tpu.memory_space<vmem>>, %arg6: memref<16x32xf32, #tpu.memory_space<vmem>>) attributes {dimension_semantics = [], scalar_prefetch = 0 : i64, scratch_operands = 0 : i64, tpu.core_type = #tpu.core_type<tc>} {
    %c0 = arith.constant 0 : index
    %c0_0 = arith.constant 0 : index
    %0 = vector.load %arg0[%c0, %c0_0] : memref<16x32xf32, #tpu.memory_space<vmem>>, vector<16x32xf32>
    %c0_1 = arith.constant 0 : index
    %c0_2 = arith.constant 0 : index
    %1 = vector.load %arg1[%c0_1, %c0_2] : memref<32x128xf32, #tpu.memory_space<vmem>>, vector<32x128xf32>
    %cst = arith.constant dense<0.000000e+00> : vector<16x128xf32>
    %2 = tpu.matmul %0, %1, %cst {dimension_numbers = #tpu.dot_dimension_numbers<[1], [0], [0], [1], [0, 0, 1, 1], [], []>} : vector<16x32xf32>, vector<32x128xf32>, vector<16x128xf32> -> vector<16x128xf32>
    %c0_3 = arith.constant 0 : index
    %c0_4 = arith.constant 0 : index
    %3 = vector.load %arg2[%c0_3, %c0_4] : memref<1x128xf32, #tpu.memory_space<vmem>>, vector<1x128xf32>
    %4 = vector.broadcast %3 : vector<1x128xf32> to vector<16x128xf32>
    %5 = arith.addf %2, %4 : vector<16x128xf32>
    %6 = vector.extract_strided_slice %5 {offsets = [0, 0], sizes = [16, 32], strides = [1, 1]} : vector<16x128xf32> to vector<16x32xf32>
    %7 = vector.extract_strided_slice %5 {offsets = [0, 32], sizes = [16, 32], strides = [1, 1]} : vector<16x128xf32> to vector<16x32xf32>
    %8 = vector.extract_strided_slice %5 {offsets = [0, 64], sizes = [16, 32], strides = [1, 1]} : vector<16x128xf32> to vector<16x32xf32>
    %c0_5 = arith.constant 0 : index
    %c0_6 = arith.constant 0 : index
    %9 = vector.load %arg3[%c0_5, %c0_6] : memref<8x32xf32, #tpu.memory_space<vmem>>, vector<8x32xf32>
    %10 = vector.extract_strided_slice %7 {offsets = [0, 0], sizes = [8, 32], strides = [1, 1]} : vector<16x32xf32> to vector<8x32xf32>
    %11 = arith.addf %10, %9 : vector<8x32xf32>
    %12 = vector.extract_strided_slice %7 {offsets = [8, 0], sizes = [8, 32], strides = [1, 1]} : vector<16x32xf32> to vector<8x32xf32>
    %13 = arith.addf %12, %9 : vector<8x32xf32>
    %14 = arith.maximumf %11, %13 : vector<8x32xf32>
    %15 = vector.extract_strided_slice %7 {offsets = [0, 0], sizes = [8, 32], strides = [1, 1]} : vector<16x32xf32> to vector<8x32xf32>
    %16 = arith.addf %15, %9 : vector<8x32xf32>
    %17 = arith.subf %16, %14 : vector<8x32xf32>
    %18 = math.exp %17 : vector<8x32xf32>
    %19 = vector.extract_strided_slice %8 {offsets = [0, 0], sizes = [8, 32], strides = [1, 1]} : vector<16x32xf32> to vector<8x32xf32>
    %20 = arith.mulf %18, %19 : vector<8x32xf32>
    %21 = vector.extract_strided_slice %7 {offsets = [8, 0], sizes = [8, 32], strides = [1, 1]} : vector<16x32xf32> to vector<8x32xf32>
    %22 = arith.addf %21, %9 : vector<8x32xf32>
    %23 = arith.subf %22, %14 : vector<8x32xf32>
    %24 = math.exp %23 : vector<8x32xf32>
    %25 = arith.addf %18, %24 : vector<8x32xf32>
    %26 = vector.extract_strided_slice %8 {offsets = [8, 0], sizes = [8, 32], strides = [1, 1]} : vector<16x32xf32> to vector<8x32xf32>
    %27 = arith.mulf %24, %26 : vector<8x32xf32>
    %28 = arith.addf %20, %27 : vector<8x32xf32>
    %29 = tpu.reciprocal %25 {approx = true} : vector<8x32xf32> -> vector<8x32xf32>
    %30 = arith.mulf %25, %29 : vector<8x32xf32>
    %cst_7 = arith.constant 2.000000e+00 : f32
    %31 = vector.broadcast %cst_7 : f32 to vector<8x32xf32>
    %32 = arith.subf %31, %30 : vector<8x32xf32>
    %33 = arith.mulf %29, %32 : vector<8x32xf32>
    %34 = arith.mulf %28, %33 : vector<8x32xf32>
    %cst_8 = arith.constant 5.000000e-01 : f32
    %35 = vector.broadcast %cst_8 : f32 to vector<16x32xf32>
    %36 = arith.mulf %35, %6 : vector<16x32xf32>
    %37 = math.tanh %36 : vector<16x32xf32>
    %cst_9 = arith.constant 5.000000e-01 : f32
    %38 = vector.broadcast %cst_9 : f32 to vector<16x32xf32>
    %39 = arith.mulf %38, %37 : vector<16x32xf32>
    %cst_10 = arith.constant 5.000000e-01 : f32
    %40 = vector.broadcast %cst_10 : f32 to vector<16x32xf32>
    %41 = arith.addf %39, %40 : vector<16x32xf32>
    %42 = vector.extract_strided_slice %41 {offsets = [0, 0], sizes = [8, 32], strides = [1, 1]} : vector<16x32xf32> to vector<8x32xf32>
    %43 = arith.mulf %42, %34 : vector<8x32xf32>
    %44 = vector.extract_strided_slice %41 {offsets = [8, 0], sizes = [8, 32], strides = [1, 1]} : vector<16x32xf32> to vector<8x32xf32>
    %45 = arith.mulf %44, %34 : vector<8x32xf32>
    %46 = tpu.concatenate %43, %45 in 0 : vector<8x32xf32>, vector<8x32xf32> -> vector<16x32xf32>
    %c0_11 = arith.constant 0 : index
    %c0_12 = arith.constant 0 : index
    %47 = vector.load %arg4[%c0_11, %c0_12] : memref<32x32xf32, #tpu.memory_space<vmem>>, vector<32x32xf32>
    %cst_13 = arith.constant dense<0.000000e+00> : vector<16x32xf32>
    %48 = tpu.matmul %46, %47, %cst_13 {dimension_numbers = #tpu.dot_dimension_numbers<[1], [0], [0], [1], [0, 0, 1, 1], [], []>} : vector<16x32xf32>, vector<32x32xf32>, vector<16x32xf32> -> vector<16x32xf32>
    %c0_14 = arith.constant 0 : index
    %c0_15 = arith.constant 0 : index
    %49 = vector.load %arg5[%c0_14, %c0_15] : memref<1x32xf32, #tpu.memory_space<vmem>>, vector<1x32xf32>
    %50 = vector.broadcast %49 : vector<1x32xf32> to vector<16x32xf32>
    %51 = arith.addf %48, %50 : vector<16x32xf32>
    %c0_16 = arith.constant 0 : index
    %c0_17 = arith.constant 0 : index
    %52 = vector.load %arg6[%c0_16, %c0_17] : memref<16x32xf32, #tpu.memory_space<vmem>>, vector<16x32xf32>
    tpu.vector_store %arg6[%c0_16, %c0_17], %51 {strides = array<i32>} : memref<16x32xf32, #tpu.memory_space<vmem>>, vector<16x32xf32>,
    return
  }
}

</mosaic_0001>

<bundles_post_ra>
// kernel: aft_full_attention.1
= control target key start
LH: loop header
LB: loop body
LE: loop exit
PB: predicated region body
PF: predicated region fallthrough
CT: control target
= control target key end

     0   :  { %11 = vsyncpa [#allocation3], 0  ;;  %s583_s0 = inlined_call_operand.hbm [shape: f32[16,32], index: 0, kind: input, shape index: {}]   ;;  %s584_s1 = inlined_call_operand.hbm [shape: f32[32,128], index: 1, kind: input, shape index: {}]   ;;  %s585_s2 = inlined_call_operand.vmem [shape: f32[1,128], index: 2, kind: input, shape index: {}]   ;;  %s586_s3 = inlined_call_operand.hbm [shape: f32[8,32], index: 3, kind: input, shape index: {}]   ;;  %s587_s4 = inlined_call_operand.hbm [shape: f32[32,32], index: 4, kind: input, shape index: {}]   ;;  %s588_s5 = inlined_call_operand.vmem [shape: f32[1,32], index: 5, kind: input, shape index: {}]   ;;  %s589_s6 = inlined_call_operand.hbm [shape: f32[16,32], index: 6, kind: output, shape index: {}]  }
   0x1   :  { %12 = vsyncpa [#allocation6], 0 }
   0x2   :  { %13 = vsyncpa [#allocation9], 0 }
   0x3   :  { %14 = vsyncpa [#allocation4], 0  ;;  %s497_s21 = smov [#allocation5]   ;;  %s498_s23 = smov [#allocation2]  }
   0x4   :  { %s32_s22 = sshll.u32 %s497_s21, 4  ;;  %s20_s24 = sshll.u32 %s498_s23, 4  ;;  %s33_s22 = int_to_ptr.vmem [resolvable:$true] %s32_s22  ;;  %s21_s24 = int_to_ptr.vmem [resolvable:$true] %s20_s24 }
   0x5   :  { %s397_s25 = scalar_lea.vmem %s33_s22, 512  ;;  %p402_p1 = scmp.lt.s32.totalorder %s33_s22, %s33_s22 }
   0x6   :  { %p398_p0 = scmp.ne.s32.totalorder %s33_s22, %s397_s25  ;;  %p403_p2 = scmp.lt.s32.totalorder %s397_s25, %s397_s25 }
   0x8   :  { %p404_p3 = por %p403_p2, %p402_p1 }
   0xa   :  { %p405_p4 = pnand %p404_p3, %p398_p0 }
   0xc   :  { %408 = shalt.err (!%p405_p4)
}
   0xd   :  { %s499_s26 = smov 128   ;;  %s500_s27 = smov 8  }
   0xe   :  { %38 = dma.hbm_to_vmem [thread:$0]  %s584_s1, 512, %s33_s22, [#allocation6], %s499_s26, %s499_s26, %s500_s27  }
   0xf   :  { %s417_s30 = scalar_lea.vmem %s21_s24, 256  ;;  %p422_p6 = scmp.lt.s32.totalorder %s21_s24, %s21_s24 }
  0x10   :  { %p418_p5 = scmp.ne.s32.totalorder %s21_s24, %s417_s30  ;;  %p423_p7 = scmp.lt.s32.totalorder %s417_s30, %s417_s30 }
  0x12   :  { %p424_p8 = por %p423_p7, %p422_p6 }
  0x14   :  { %p425_p9 = pnand %p424_p8, %p418_p5 }
  0x16   :  { %428 = shalt.err (!%p425_p9)
}
  0x17   :  { %26 = dma.hbm_to_vmem [thread:$0]  %s583_s0, 256, %s21_s24, [#allocation3], %s499_s26, %s499_s26, %s500_s27  }
  0x18   :  { %s501_s9 = smov [#allocation7]   ;;  %s502_s11 = smov [#allocation8]  }
  0x19   :  { %s47_s10 = sshll.u32 %s501_s9, 4  ;;  %s56_s12 = sshll.u32 %s502_s11, 4  ;;  %s48_s10 = int_to_ptr.vmem [resolvable:$true] %s47_s10  ;;  %s57_s12 = int_to_ptr.vmem [resolvable:$true] %s56_s12 }
  0x1a   :  { %s437_s1 = scalar_lea.vmem %s48_s10, 128  ;;  %p442_p11 = scmp.lt.s32.totalorder %s48_s10, %s48_s10 }
  0x1b   :  { %p438_p10 = scmp.ne.s32.totalorder %s48_s10, %s437_s1  ;;  %p443_p12 = scmp.lt.s32.totalorder %s437_s1, %s437_s1 }
  0x1d   :  { %p444_p13 = por %p443_p12, %p442_p11 }
  0x1f   :  { %p445_p0 = pnand %p444_p13, %p438_p10 }
  0x21   :  { %448 = shalt.err (!%p445_p0)
}
  0x22   :  { %50 = dma.hbm_to_vmem [thread:$0]  %s586_s3, 128, %s48_s10, [#allocation6]  }
  0x23   :  { %s457_s15 = scalar_lea.vmem %s57_s12, 512  ;;  %p462_p2 = scmp.lt.s32.totalorder %s57_s12, %s57_s12 }
  0x24   :  { %p458_p1 = scmp.ne.s32.totalorder %s57_s12, %s457_s15  ;;  %p463_p3 = scmp.lt.s32.totalorder %s457_s15, %s457_s15 }
  0x26   :  { %p464_p4 = por %p463_p3, %p462_p2 }
  0x28   :  { %p465_p5 = pnand %p464_p4, %p458_p1 }
  0x2a   :  { %468 = shalt.err (!%p465_p5)
}
  0x2b   :  { %62 = dma.hbm_to_vmem [thread:$0]  %s587_s4, 512, %s57_s12, [#allocation9], %s499_s26, %s499_s26, %s500_s27  }
  0x2c   :  { %489 = dma.done.wait [#allocation3], 256  }
  0x2d   :  { %490 = vsyncadd [#allocation3], 4294967040 }
  0x2e   :  { %491 = dma.done.wait [#allocation6], 640  }
  0x2f   :  { %492 = vsyncadd [#allocation6], 4294966656 }
  0x30   :  { %493 = dma.done.wait [#allocation9], 512  }
  0x31   :  { %494 = vsyncadd [#allocation9], 4294966784  ;;  %vm90_vm0 = vcmask 261120   ;;  %v82_v0 = vld [vmem:[#allocation5 + $0x18] sm:$0xff]  ;;  %v81_v1 = vld [vmem:[#allocation5 + $0x10] sm:$0xff]  ;;  %s503_s3 = smov 32  }
  0x32   :  { %348 = vmatprep.subr.mxu0 %v82_v0  ;;  %v77_v2 = vld [vmem:[#allocation2] sm:$0xff]  ;;  %v80_v3 = vld [vmem:[#allocation5 + $0x8] sm:$0xff]  ;;  %v172_v4 = vld [vmem:[#allocation7] sm:$0xff]  ;;  %s504_s18 = smov 96   ;;  %s505_s20 = smov [#allocation10]  }
  0x33   :  { %349 = vmatpush3.msra.mxu0 %v82_v0  ;;  %356 = vmatprep.mubr.msk.f32.mxu0 %vm90_vm0, %v77_v2  ;;  %v79_v5 = vld [vmem:[#allocation5] sm:$0xff]  ;;  %v78_v6 = vld [vmem:[#allocation2 + $0x8] sm:$0xff]  ;;  %v330_v7 = vld [vmem:[%s585_s2] ss:$0 sm:$0xff]  ;;  %s316_s21 = sshll.u32 %s505_s20, 4  ;;  %s317_s21 = int_to_ptr.vmem [resolvable:$true] %s316_s21 }
  0x34   :  { %350 = vmatprep.subr.mxu0 %v81_v1  ;;  %174 = vrot.lane.b32.xlu0 %v172_v4, %s503_s3  ;;  %v220_v8 = vld [vmem:[#allocation8 + $0x18] sm:$0xff]  ;;  %v219_v9 = vld [vmem:[#allocation8 + $0x10] sm:$0xff]  ;;  %v218_v11 = vld [vmem:[#allocation8 + $0x8] sm:$0xff]  ;;  %s469_s22 = scalar_lea.vmem %s317_s21, 256  ;;  %p474_p7 = scmp.lt.s32.totalorder %s317_s21, %s317_s21 }
  0x35   :  { %351 = vmatpush3.msra.mxu0 %v81_v1  ;;  %359 = vmatprep.subr.mxu1 %v220_v8  ;;  %v217_v27 = vld [vmem:[#allocation8] sm:$0xff]  ;;  %v333_v48 = vld [vmem:[%s588_s5] ss:$0 sm:$0xff]  ;;  %p470_p6 = scmp.ne.s32.totalorder %s317_s21, %s469_s22  ;;  %p475_p8 = scmp.lt.s32.totalorder %s469_s22, %s469_s22 }
  0x36   :  { %352 = vmatprep.subr.mxu0 %v80_v3  ;;  %360 = vmatpush3.msra.mxu1 %v220_v8 }
  0x37   :  { %353 = vmatpush3.msra.mxu0 %v80_v3  ;;  %361 = vmatprep.subr.mxu1 %v219_v9  ;;  %p476_p9 = por %p475_p8, %p474_p7 }
  0x38   :  { %354 = vmatprep.subr.mxu0 %v79_v5  ;;  %362 = vmatpush3.msra.mxu1 %v219_v9 }
  0x39   :  { %355 = vmatpush3.msra.mxu0 %v79_v5  ;;  %363 = vmatprep.subr.mxu1 %v218_v11  ;;  %p477_p10 = pnand %p476_p9, %p470_p6 }
  0x3a   :  { %357 = vmatmul.mubr.msk.f32.vlgmr.msra.gmra.mxu0 %vm90_vm0, %v78_v6  ;;  %364 = vmatpush3.msra.mxu1 %v218_v11 }
  0x3b   :  { %365 = vmatprep.subr.mxu1 %v217_v27 }
  0x3c   :  { %366 = vmatpush3.msra.mxu1 %v217_v27 }
  0xa6   :  { %v175_v13 = vpop.permute.xlu0 %174 }
  0xfa   :  { %v358_v10 = vpop.f32.mrf.mxu0 }
  0xfb   :  { %v169_v12 = vadd.f32 %v358_v10, %v330_v7 }
  0xfc   :  { %v163_v14 = vpop.f32.mrf.mxu0 }
  0xfd   :  { %v164_v15 = vadd.f32 %v330_v7, %v163_v14  ;;  %193 = vrot.lane.b32.xlu1 %v169_v12, %s504_s18  ;;  %v178_v16 = vadd.f32 %v175_v13, %v169_v12  ;;  %v204_v37 = vmul.f32 0.5, %v169_v12 }
  0xff   :  { %v177_v17 = vadd.f32 %v175_v13, %v164_v15  ;;  %184 = vrot.lane.b32.xlu0 %v164_v15, %s504_s18  ;;  %v203_v38 = vmul.f32 0.5, %v164_v15 }
 0x101   :  { %v179_v18 = vmax.f32 %v177_v17, %v178_v16 }
 0x103   :  { %v180_v19 = vsub.f32 %v177_v17, %v179_v18  ;;  %v188_v20 = vsub.f32 %v178_v16, %v179_v18 }
 0x105   :  { %v181_v21 = vmul.f32 1.442695, %v180_v19  ;;  %v189_v22 = vmul.f32 1.442695, %v188_v20 }
 0x107   :  { %379 = vpow2.f32 %v181_v21 }
 0x108   :  { %381 = vpow2.f32 %v189_v22 }
 0x114   :  { %v380_v23 = vpop.eup %379 }
 0x115   :  { %v382_v24 = vpop.eup %381 }
 0x116   :  { %v191_v25 = vadd.f32 %v382_v24, %v380_v23 }
 0x118   :  { %383 = vrcp.f32 %v191_v25 }
 0x119   :  { %385 = vtanh.f32 %v204_v37 }
 0x11a   :  { %387 = vtanh.f32 %v203_v38 }
 0x125   :  { %v384_v26 = vpop.eup %383 }
 0x126   :  { %v199_v28 = vmul.f32 %v384_v26, %v191_v25  ;;  %v386_v39 = vpop.eup %385 }
 0x127   :  { %v388_v40 = vpop.eup %387  ;;  %v208_v42 = vmul.f32 0.5, %v386_v39 }
 0x128   :  { %v200_v30 = vsub.f32 2.0, %v199_v28  ;;  %v207_v41 = vmul.f32 0.5, %v388_v40 }
 0x129   :  { %v210_v44 = vadd.f32 0.5, %v208_v42 }
 0x12a   :  { %v201_v35 = vmul.f32 %v384_v26, %v200_v30  ;;  %v209_v43 = vadd.f32 0.5, %v207_v41 }
 0x16f   :  { %v194_v29 = vpop.permute.xlu1 %193 }
 0x170   :  { %v196_v32 = vmul.f32 %v382_v24, %v194_v29 }
 0x171   :  { %v185_v31 = vpop.permute.xlu0 %184 }
 0x172   :  { %v187_v33 = vmul.f32 %v380_v23, %v185_v31 }
 0x174   :  { %v197_v34 = vadd.f32 %v196_v32, %v187_v33 }
 0x176   :  { %v202_v36 = vmul.f32 %v201_v35, %v197_v34 }
 0x178   :  { %212 = vrot.lane.b32.xlu1 %v202_v36, %s504_s18 }
 0x1ea   :  { %v213_v45 = vpop.permute.xlu1 %212 }
 0x1eb   :  { %v215_v46 = vmul.f32 %v213_v45, %v209_v43  ;;  %v216_v47 = vmul.f32 %v213_v45, %v210_v44 }
 0x1ed   :  { %367 = vmatprep.mubr.msk.f32.mxu1 %vm90_vm0, %v215_v46 }
 0x1ee   :  { %368 = vmatmul.mubr.msk.f32.vlgmr.msra.gmra.mxu1 %vm90_vm0, %v216_v47 }
 0x2ae   :  { %v369_v49 = vpop.f32.mrf.mxu1 }
 0x2af   :  { %v306_v50 = vadd.f32 %v369_v49, %v333_v48 }
 0x2b0   :  { %v300_v51 = vpop.f32.mrf.mxu1 }
 0x2b1   :  { %310 = vst.msk [vmem:[#allocation10 + $0x8] sm:$0xff] %vm90_vm0, %v306_v50  ;;  %v301_v52 = vadd.f32 %v333_v48, %v300_v51 }
 0x2b3   :  { %309 = vst.msk [vmem:[#allocation10] sm:$0xff] %vm90_vm0, %v301_v52 }
 0x2b4   :  { %480 = shalt.err (!%p477_p10)
}
 0x2b5   :  { %322 = dma.vmem_to_hbm [thread:$0]  %s317_s21, 256, %s589_s6, [#allocation4], %s499_s26, %s499_s26, %s500_s27  }
 0x2b6   :  { %495 = dma.done.wait [#allocation4], 256  }
 0x2b7   :  { %496 = vsyncadd [#allocation4], 4294967040 }
 0x2b8   :  { %326 = vsyncpa [#allocation3], 1 }
 0x2b9   :  { %327 = vsyncpa [#allocation6], 1 }
 0x2ba   :  { %328 = vsyncpa [#allocation9], 1 }
 0x2bb   :  { %329 = vsyncpa [#allocation4], 1 }

</bundles_post_ra>
